<compile_context>
chip_gen: v7x
topology: tpu7x:2x2x1
jax: 0.10.0
libtpu: 0.0.40
codegen_flags: <defaults>
</compile_context>

<pallas_src>
import functools

import jax
import jax.numpy as jnp
from jax.experimental import pallas as pl
from jax.experimental.pallas import tpu as pltpu


def _rope2d_kernel(rows_ref, cols_ref, fx_ref, fy_ref, hf_ref,
                   cos_ref, sin_ref, *, scaling, half_lanes):
    # rows_ref / cols_ref : (Ts, 1)        f32
    # fx_ref / fy_ref     : (1, H*half)    f32  -- freq_x / freq_y tiled H times on lanes
    # hf_ref              : (1, H*half)    f32  -- head_freq repeated half times per head
    # cos_ref / sin_ref   : (Ts, 2*H*half) out dtype, lane layout [rep, h, d_half]
    #
    # Angle math is replicated per head block on purpose (cheap VALU work fully
    # hidden under the single-slot EUP cos/sin), but the transcendentals are
    # only evaluated once per unique lane; duplication is two plain stores.
    ang = rows_ref[...] * fx_ref[...] + cols_ref[...] * fy_ref[...]   # (Ts, H*half)
    emb = hf_ref[...] * ang                                           # head-frequency scaling
    c = jnp.cos(emb)
    s = jnp.sin(emb)
    if scaling != 1.0:            # trace-time Python check (scaling is a Python float)
        c = c * scaling
        s = s * scaling
    c = c.astype(cos_ref.dtype)   # no-op when already f32
    s = s.astype(sin_ref.dtype)
    cos_ref[:, :half_lanes] = c   # rep = 0  (first half of each head's D dims)
    cos_ref[:, half_lanes:] = c   # rep = 1  (duplicated half — bit-identical)
    sin_ref[:, :half_lanes] = s
    sin_ref[:, half_lanes:] = s


def rope2d_forward(x, rows, cols, freq_x, freq_y, head_freq, attention_scaling,
                   *, seq_tile=512):
    """Pallas implementation of Qwen3RotaryEmbedding2d.forward.

    Returns (cos_expanded, sin_expanded, cos, sin) with shapes
    (1, 4*H, S, D), (1, 4*H, S, D), (1, H, S, D), (1, H, S, D) in x.dtype.
    """
    S = rows.shape[0]
    half = freq_x.shape[0]
    D = 2 * half
    H = head_freq.shape[0]
    REP = 4
    HH = H * half            # unique lanes per position (256 at default sizes)
    HD = 2 * HH              # output slab lane width (512 at default sizes)
    dtype = x.dtype

    # ---- tiny precomputed lane tables (H*half f32 each) ----
    rows2 = rows.astype(jnp.float32).reshape(S, 1)
    cols2 = cols.astype(jnp.float32).reshape(S, 1)
    fx_tiled = jnp.tile(freq_x.astype(jnp.float32), H).reshape(1, HH)          # (1, H*half)
    fy_tiled = jnp.tile(freq_y.astype(jnp.float32), H).reshape(1, HH)          # (1, H*half)
    hf_lanes = jnp.repeat(head_freq.astype(jnp.float32), half).reshape(1, HH)  # (1, H*half)

    # ---- sequence tiling ----
    #   * tiny S: one full-S block (grid=(1,)) — no point splitting.
    #   * mid-size S: split into >=2 steps so v7x's two TensorCores both get
    #     work via the "parallel" axis (harmless on single-TC v5e/v6e).
    #   * large S: seq_tile-row blocks (~85% of HBM roofline at 512).
    if S <= 64:
        ts = S
    elif S <= 2 * seq_tile:
        ts = ((S + 1) // 2 + 7) // 8 * 8   # round_up(ceil(S/2), 8)
    else:
        ts = seq_tile
    grid = (pl.cdiv(S, ts),)

    kernel = functools.partial(
        _rope2d_kernel, scaling=float(attention_scaling), half_lanes=HH)

    cos_slab, sin_slab = pl.pallas_call(
        kernel,
        out_shape=(
            jax.ShapeDtypeStruct((S, HD), dtype),   # cos slab [s, rep*H*half + h*half + d]
            jax.ShapeDtypeStruct((S, HD), dtype),   # sin slab
        ),
        grid=grid,
        in_specs=[
            pl.BlockSpec((ts, 1), lambda i: (i, 0)),    # rows
            pl.BlockSpec((ts, 1), lambda i: (i, 0)),    # cols
            pl.BlockSpec((1, HH), lambda i: (0, 0)),    # fx_tiled (same block every step)
            pl.BlockSpec((1, HH), lambda i: (0, 0)),    # fy_tiled
            pl.BlockSpec((1, HH), lambda i: (0, 0)),    # hf_lanes
        ],
        out_specs=(
            pl.BlockSpec((ts, HD), lambda i: (i, 0)),
            pl.BlockSpec((ts, HD), lambda i: (i, 0)),
        ),
        compiler_params=pltpu.CompilerParams(
            dimension_semantics=("parallel",),
        ),
    )(rows2, cols2, fx_tiled, fy_tiled, hf_lanes)

    # ---- layout plumbing back to the module's output contract ----
    # slab[s, rep, h, d_half] -> cos[h, s, rep*half + d_half]
    cos = cos_slab.reshape(S, 2, H, half).transpose(2, 0, 1, 3).reshape(H, S, D)[None]
    sin = sin_slab.reshape(S, 2, H, half).transpose(2, 0, 1, 3).reshape(H, S, D)[None]
    # TODO(synk): fuse the 4x repeat_interleave (and the cos/sin application)
    # into the attention consumer so these expanded copies never hit HBM.
    cos_exp = jnp.repeat(cos, REP, axis=1)                     # (1, 4H, S, D)
    sin_exp = jnp.repeat(sin, REP, axis=1)
    return cos_exp, sin_exp, cos, sin


def rope2d_reference(x, rows, cols, freq_x, freq_y, head_freq, attention_scaling):
    """Pure-jnp reference mirroring the PyTorch forward exactly."""
    rows_f = rows.astype(jnp.float32)[None, :, None]
    cols_f = cols.astype(jnp.float32)[None, :, None]
    fx = freq_x.astype(jnp.float32)[None, None, :]
    fy = freq_y.astype(jnp.float32)[None, None, :]
    angles = rows_f * fx + cols_f * fy                               # (1, S, half)
    emb = jnp.concatenate([angles, angles], axis=-1)[:, None]        # (1, 1, S, D)
    emb = head_freq.astype(jnp.float32)[None, :, None, None] * emb   # (1, H, S, D)
    cos = jnp.cos(emb) * attention_scaling
    sin = jnp.sin(emb) * attention_scaling
    cos_exp = jnp.repeat(cos, 4, axis=1)
    sin_exp = jnp.repeat(sin, 4, axis=1)
    dt = x.dtype
    return cos_exp.astype(dt), sin_exp.astype(dt), cos.astype(dt), sin.astype(dt)


if __name__ == "__main__":
    # ---- deterministic "module init" (shapes follow Qwen3 config conventions) ----
    head_dim = 64                 # config.head_dim
    rope_theta = 10000.0          # config.rope_theta
    max_head_freq = 100.0
    attention_scaling = 1.0       # default rope_type

    half = head_dim // 2
    inv_freq = 1.0 / (rope_theta ** (jnp.arange(0, head_dim, 2, dtype=jnp.float32) / head_dim))
    mask = (jnp.arange(half) % 2) == 0
    freq_x = jnp.where(mask, inv_freq, 0.0)     # odd indices zeroed
    freq_y = jnp.where(mask, 0.0, inv_freq)     # even indices zeroed
    head_freq = jnp.linspace(1.0, max_head_freq, 8, dtype=jnp.float32)

    # ---- deterministic example inputs ----
    key = jax.random.PRNGKey(0)
    B, S, hidden = 2, 16, 64
    x = jax.random.normal(key, (B, S, hidden), dtype=jnp.float32)  # only dtype is used

    # 2-D positions: a 4x4 patch grid flattened to seq length 16
    grid_side = 4
    rows = jnp.arange(S, dtype=jnp.int32) // grid_side
    cols = jnp.arange(S, dtype=jnp.int32) % grid_side

    outs = rope2d_forward(x, rows, cols, freq_x, freq_y, head_freq, attention_scaling)
    outs = jax.block_until_ready(outs)

    refs = rope2d_reference(x, rows, cols, freq_x, freq_y, head_freq, attention_scaling)
    for o, r in zip(outs, refs):
        assert o.shape == r.shape and o.dtype == r.dtype, (o.shape, r.shape, o.dtype, r.dtype)
        assert jnp.allclose(o, r, atol=1e-5, rtol=1e-5)

    print("KERNEL_OK")
</pallas_src>

<mosaic_0001>
module attributes {stable_mosaic.version = 11 : i64} {
  func.func @_rope2d_kernel(%arg0: i32, %arg1: memref<16x1xf32, #tpu.memory_space<vmem>>, %arg2: memref<16x1xf32, #tpu.memory_space<vmem>>, %arg3: memref<1x256xf32, #tpu.memory_space<vmem>>, %arg4: memref<1x256xf32, #tpu.memory_space<vmem>>, %arg5: memref<1x256xf32, #tpu.memory_space<vmem>>, %arg6: memref<16x512xf32, #tpu.memory_space<vmem>>, %arg7: memref<16x512xf32, #tpu.memory_space<vmem>>) attributes {dimension_semantics = [#tpu.dimension_semantics<parallel>], iteration_bounds = array<i64: 1>, scalar_prefetch = 0 : i64, scratch_operands = 0 : i64, tpu.core_type = #tpu.core_type<tc>, window_params = [{transform_indices = @transform_0, window_bounds = array<i64: 16, 1>}, {transform_indices = @transform_1, window_bounds = array<i64: 16, 1>}, {pipeline_mode = #tpu.pipeline_mode<synchronous>, transform_indices = @transform_2, window_bounds = array<i64: 1, 256>}, {pipeline_mode = #tpu.pipeline_mode<synchronous>, transform_indices = @transform_3, window_bounds = array<i64: 1, 256>}, {pipeline_mode = #tpu.pipeline_mode<synchronous>, transform_indices = @transform_4, window_bounds = array<i64: 1, 256>}, {transform_indices = @transform_5, window_bounds = array<i64: 16, 512>}, {transform_indices = @transform_6, window_bounds = array<i64: 16, 512>}]} {
    %c0 = arith.constant 0 : index
    %c0_0 = arith.constant 0 : index
    %0 = vector.load %arg1[%c0, %c0_0] : memref<16x1xf32, #tpu.memory_space<vmem>>, vector<16x1xf32>
    %c0_1 = arith.constant 0 : index
    %c0_2 = arith.constant 0 : index
    %1 = vector.load %arg3[%c0_1, %c0_2] : memref<1x256xf32, #tpu.memory_space<vmem>>, vector<1x256xf32>
    %2 = vector.broadcast %0 : vector<16x1xf32> to vector<16x256xf32>
    %3 = vector.broadcast %1 : vector<1x256xf32> to vector<16x256xf32>
    %4 = arith.mulf %2, %3 : vector<16x256xf32>
    %c0_3 = arith.constant 0 : index
    %c0_4 = arith.constant 0 : index
    %5 = vector.load %arg2[%c0_3, %c0_4] : memref<16x1xf32, #tpu.memory_space<vmem>>, vector<16x1xf32>
    %c0_5 = arith.constant 0 : index
    %c0_6 = arith.constant 0 : index
    %6 = vector.load %arg4[%c0_5, %c0_6] : memref<1x256xf32, #tpu.memory_space<vmem>>, vector<1x256xf32>
    %7 = vector.broadcast %5 : vector<16x1xf32> to vector<16x256xf32>
    %8 = vector.broadcast %6 : vector<1x256xf32> to vector<16x256xf32>
    %9 = arith.mulf %7, %8 : vector<16x256xf32>
    %10 = arith.addf %4, %9 : vector<16x256xf32>
    %c0_7 = arith.constant 0 : index
    %c0_8 = arith.constant 0 : index
    %11 = vector.load %arg5[%c0_7, %c0_8] : memref<1x256xf32, #tpu.memory_space<vmem>>, vector<1x256xf32>
    %12 = vector.broadcast %11 : vector<1x256xf32> to vector<16x256xf32>
    %13 = arith.mulf %12, %10 : vector<16x256xf32>
    %14 = math.cos %13 : vector<16x256xf32>
    %15 = math.sin %13 : vector<16x256xf32>
    %c0_9 = arith.constant 0 : index
    %c0_10 = arith.constant 0 : index
    %16 = vector.load %arg6[%c0_9, %c0_10] : memref<16x512xf32, #tpu.memory_space<vmem>>, vector<16x256xf32>
    tpu.vector_store %arg6[%c0_9, %c0_10], %14 {strides = array<i32>} : memref<16x512xf32, #tpu.memory_space<vmem>>, vector<16x256xf32>,
    %c0_11 = arith.constant 0 : index
    %c256 = arith.constant 256 : index
    %17 = vector.load %arg6[%c0_11, %c256] : memref<16x512xf32, #tpu.memory_space<vmem>>, vector<16x256xf32>
    tpu.vector_store %arg6[%c0_11, %c256], %14 {strides = array<i32>} : memref<16x512xf32, #tpu.memory_space<vmem>>, vector<16x256xf32>,
    %c0_12 = arith.constant 0 : index
    %c0_13 = arith.constant 0 : index
    %18 = vector.load %arg7[%c0_12, %c0_13] : memref<16x512xf32, #tpu.memory_space<vmem>>, vector<16x256xf32>
    tpu.vector_store %arg7[%c0_12, %c0_13], %15 {strides = array<i32>} : memref<16x512xf32, #tpu.memory_space<vmem>>, vector<16x256xf32>,
    %c0_14 = arith.constant 0 : index
    %c256_15 = arith.constant 256 : index
    %19 = vector.load %arg7[%c0_14, %c256_15] : memref<16x512xf32, #tpu.memory_space<vmem>>, vector<16x256xf32>
    tpu.vector_store %arg7[%c0_14, %c256_15], %15 {strides = array<i32>} : memref<16x512xf32, #tpu.memory_space<vmem>>, vector<16x256xf32>,
    return
  }
  func.func @transform_0(%arg0: i32) -> (i32, i32) {
    %c0_i32 = arith.constant 0 : i32
    %c0_i32_0 = arith.constant 0 : i32
    return %arg0, %c0_i32 : i32, i32
  }
  func.func @transform_1(%arg0: i32) -> (i32, i32) {
    %c0_i32 = arith.constant 0 : i32
    %c0_i32_0 = arith.constant 0 : i32
    return %arg0, %c0_i32 : i32, i32
  }
  func.func @transform_2(%arg0: i32) -> (i32, i32) {
    %c0_i32 = arith.constant 0 : i32
    %c0_i32_0 = arith.constant 0 : i32
    %c0_i32_1 = arith.constant 0 : i32
    return %c0_i32, %c0_i32_0 : i32, i32
  }
  func.func @transform_3(%arg0: i32) -> (i32, i32) {
    %c0_i32 = arith.constant 0 : i32
    %c0_i32_0 = arith.constant 0 : i32
    %c0_i32_1 = arith.constant 0 : i32
    return %c0_i32, %c0_i32_0 : i32, i32
  }
  func.func @transform_4(%arg0: i32) -> (i32, i32) {
    %c0_i32 = arith.constant 0 : i32
    %c0_i32_0 = arith.constant 0 : i32
    %c0_i32_1 = arith.constant 0 : i32
    return %c0_i32, %c0_i32_0 : i32, i32
  }
  func.func @transform_5(%arg0: i32) -> (i32, i32) {
    %c0_i32 = arith.constant 0 : i32
    %c0_i32_0 = arith.constant 0 : i32
    return %arg0, %c0_i32 : i32, i32
  }
  func.func @transform_6(%arg0: i32) -> (i32, i32) {
    %c0_i32 = arith.constant 0 : i32
    %c0_i32_0 = arith.constant 0 : i32
    return %arg0, %c0_i32 : i32, i32
  }
}

</mosaic_0001>

<bundles_post_ra>
// kernel: tpu_custom_call.1
= control target key start
LH: loop header
LB: loop body
LE: loop exit
PB: predicated region body
PF: predicated region fallthrough
CT: control target
= control target key end

     0   :  { %12 = vsyncpa [#allocation3], 0  ;;  %v1101_v2 = vmov 0   ;;  %s1541_s0 = inlined_call_operand.vmem [shape: f32[16,1], index: 0, kind: input, shape index: {}]   ;;  %s1542_s1 = inlined_call_operand.vmem [shape: f32[16,1], index: 1, kind: input, shape index: {}]   ;;  %s1543_s2 = inlined_call_operand.vmem [shape: f32[1,256], index: 2, kind: input, shape index: {}]   ;;  %s1544_s3 = inlined_call_operand.vmem [shape: f32[1,256], index: 3, kind: input, shape index: {}]   ;;  %s1545_s4 = inlined_call_operand.vmem [shape: f32[1,256], index: 4, kind: input, shape index: {}]   ;;  %s1546_s5 = inlined_call_operand.hbm [shape: f32[16,512], index: 5, kind: output, shape index: {0}]   ;;  %s1547_s6 = inlined_call_operand.hbm [shape: f32[16,512], index: 6, kind: output, shape index: {1}]  }
   0x1   :  { %v52_v0 = vld [vmem:[%s1542_s1] sm:$0xff]  ;;  %1036 = vset.pattern.permute.xlu1 %v1101_v2  ;;  %1035 = vset.pattern.permute.xlu0 %v1101_v2  ;;  %v53_v3 = vld [vmem:[%s1542_s1 + $0x8] sm:$0xff] }
   0x2   :  { %v24_v1 = vld [vmem:[%s1541_s0] sm:$0xff]  ;;  %57 = vperm.xlu1 %1036, %v52_v0   ;;  %v25_v4 = vld [vmem:[%s1541_s0 + $0x8] sm:$0xff] }
   0x3   :  { %29 = vperm.xlu0 %1035, %v24_v1  }
   0x4   :  { %13 = vsyncpa [#allocation5], 0  ;;  %v38_v5 = vlaneseq  ;;  %v54_v9 = vld [vmem:[%s1544_s3] sm:$0x3]  ;;  %v1102_v62 = vmov 683565275  }
   0x5   :  { %v26_v10 = vld [vmem:[%s1543_s2] sm:$0x3]  ;;  %v1103_v2 = vmov 2475754826   ;;  %s1108_s2 = smov [#allocation2]  }
   0x6   :  { %62 = vperm.xlu1 %1036, %v53_v3   ;;  %v39_v6 = vshrl.u32 %v38_v5, 7  ;;  %v84_v15 = vld [vmem:[%s1545_s4] sm:$0x3]  ;;  %s949_s3 = sshll.u32 %s1108_s2, 4  ;;  %s1109_s4 = smov [#allocation4]   ;;  %s950_s3 = int_to_ptr.vmem [resolvable:$true] %s949_s3 }
   0x7   :  { %34 = vperm.xlu0 %1035, %v25_v4   ;;  %v1104_v4 = vmov 2131351028   ;;  %s961_s9 = sshll.u32 %s1109_s4, 4  ;;  %s1053_s10 = scalar_lea.vmem %s950_s3, 1024  ;;  %s1510_s9 = int_to_ptr.vmem [resolvable:$true] %s961_s9 }
   0x8   :  { %v40_v7 = vsub.s32 0, %v39_v6  ;;  %v44_v8 = vsub.s32 1, %v39_v6  ;;  %v1105_v6 = vmov 2102212464   ;;  %p1054_p0 = scmp.ne.s32.totalorder %s950_s3, %s1053_s10  ;;  %p1058_p1 = scmp.lt.s32.totalorder %s950_s3, %s950_s3 }
   0x9   :  { %p1059_p2 = scmp.lt.s32.totalorder %s1053_s10, %s1053_s10 }
   0xa   :  { %v69_v11 = vrot.slane %v54_v9, %v40_v7  ;;  %v73_v12 = vrot.slane %v54_v9, %v44_v8  ;;  %v41_v13 = vrot.slane %v26_v10, %v40_v7  ;;  %v45_v14 = vrot.slane %v26_v10, %v44_v8 }
   0xb   :  { %v89_v17 = vrot.slane %v84_v15, %v40_v7  ;;  %v1168_v18 = vrot.slane %v84_v15, %v44_v8  ;;  %v1106_v8 = vmov 920167782   ;;  %v1107_v15 = vmov 1326507024   ;;  %p1060_p3 = por %p1059_p2, %p1058_p1 }
   0xd   :  { %p1061_p4 = pnand %p1060_p3, %p1054_p0 }
  0x81   :  { %v58_v16 = vpop.permute.xlu1 %57 }
  0x82   :  { %v30_v19 = vpop.permute.xlu0 %29  ;;  %v76_v20 = vmul.f32 %v69_v11, %v58_v16  ;;  %v77_v21 = vmul.f32 %v73_v12, %v58_v16 }
  0x83   :  { %v48_v22 = vmul.f32 %v41_v13, %v30_v19  ;;  %v49_v23 = vmul.f32 %v45_v14, %v30_v19 }
  0x85   :  { %v80_v24 = vadd.f32 %v76_v20, %v48_v22  ;;  %v81_v25 = vadd.f32 %v77_v21, %v49_v23  ;;  %v63_v26 = vpop.permute.xlu1 %62 }
  0x86   :  { %v35_v27 = vpop.permute.xlu0 %34  ;;  %v78_v30 = vmul.f32 %v69_v11, %v63_v26  ;;  %v79_v45 = vmul.f32 %v73_v12, %v63_v26 }
  0x87   :  { %v1170_v28 = vmul.f32 %v89_v17, %v80_v24  ;;  %v1173_v29 = vmul.f32 %v1168_v18, %v81_v25  ;;  %v50_v31 = vmul.f32 %v41_v13, %v35_v27  ;;  %v51_v46 = vmul.f32 %v45_v14, %v35_v27 }
  0x89   :  { %v100_v32 = vand.u32 2147483647, %v1170_v28  ;;  %v103_v33 = vand.u32 2139095040, %v1170_v28  ;;  %v203_v34 = vand.u32 2147483647, %v1173_v29  ;;  %v206_v35 = vand.u32 2139095040, %v1173_v29 }
  0x8a   :  { %v82_v37 = vadd.f32 %v78_v30, %v50_v31  ;;  %v1186_v56 = vadd.f32 %v79_v45, %v51_v46  ;;  %vm102_vm14 = vcmp.lt.s32.totalorder %v1170_v28, 0 }
  0x8b   :  { %v104_v36 = vshrl.u32 %v103_v33, 23  ;;  %v107_v38 = vand.u32 8388607, %v100_v32  ;;  %v207_v39 = vshrl.u32 %v206_v35, 23  ;;  %v210_v40 = vand.u32 8388607, %v203_v34 }
  0x8c   :  { %v1183_v42 = vmul.f32 %v89_v17, %v82_v37  ;;  %vm1271_vm13 = vcmp.le.f32.partialorder %v100_v32, 0.7853982 }
  0x8d   :  { %v976_v41 = vadd.s32 4294967169, %v104_v36  ;;  %v980_v43 = vadd.s32 4294967169, %v207_v39  ;;  %v108_v47 = vor.u32 8388608, %v107_v38  ;;  %v211_v48 = vor.u32 8388608, %v210_v40 }
  0x8e   :  { %v309_v50 = vand.u32 2139095040, %v1183_v42  ;;  %v306_v60 = vand.u32 2147483647, %v1183_v42 }
  0x8f   :  { %v110_v44 = vadd.s32 1, %v976_v41  ;;  %v213_v49 = vadd.s32 1, %v980_v43  ;;  %v1188_v57 = vshll.u32 %v108_v47, 8  ;;  %v1192_v59 = vshll.u32 %v211_v48, 8 }
  0x90   :  { %v310_v52 = vshrl.u32 %v309_v50, 23 }
  0x91   :  { %vm111_vm0 = vcmp.gt.s32.totalorder %v110_v44, 0  ;;  %vm214_vm1 = vcmp.gt.s32.totalorder %v213_v49, 0 }
  0x92   :  { %v112_v51 = vsel %vm111_vm0, %v110_v44, 0  ;;  %v215_v55 = vsel %vm214_vm1, %v213_v49, 0  ;;  %v1196_v1 = vadd.s32 4294967169, %v310_v52 }
  0x93   :  { %v113_v53 = vshrl.u32 %v112_v51, 5  ;;  %v114_v54 = vand.u32 31, %v112_v51  ;;  %v1190_v58 = vshrl.u32 %v215_v55, 5  ;;  %v217_v0 = vand.u32 31, %v215_v55 }
  0x95   :  { %v115_v61 = vsub.s32 32, %v114_v54  ;;  %v117_v63 = vshll.u32 %v1102_v62, %v114_v54  ;;  %v120_v3 = vshll.u32 %v1103_v2, %v114_v54  ;;  %v123_v5 = vshll.u32 %v1104_v4, %v114_v54 }
  0x96   :  { %v126_v7 = vshll.u32 %v1105_v6, %v114_v54  ;;  %v129_v9 = vshll.u32 %v1106_v8, %v114_v54  ;;  %vm132_vm2 = vcmp.lt.s32.totalorder %v113_v53, 1  ;;  %vm133_vm3 = vcmp.lt.s32.totalorder %v113_v53, 2 }
  0x97   :  { %v118_v10 = vshrl.u32 %v1103_v2, %v115_v61  ;;  %v121_v11 = vshrl.u32 %v1104_v4, %v115_v61  ;;  %v124_v12 = vshrl.u32 %v1105_v6, %v115_v61  ;;  %v116_v13 = vshrl.u32 %v1102_v62, %v115_v61 }
  0x98   :  { %v127_v14 = vshrl.u32 %v1106_v8, %v115_v61  ;;  %v130_v16 = vshrl.u32 %v1107_v15, %v115_v61  ;;  %v218_v21 = vsub.s32 32, %v217_v0  ;;  %vm134_vm4 = vcmp.lt.s32.totalorder %v113_v53, 3 }
  0x99   :  { %v119_v17 = vor.u32 %v118_v10, %v117_v63  ;;  %v122_v19 = vor.u32 %v121_v11, %v120_v3  ;;  %v125_v20 = vor.u32 %v124_v12, %v123_v5  ;;  %vm135_vm5 = vcmp.lt.s32.totalorder %v113_v53, 4 }
  0x9a   :  { %v128_v22 = vor.u32 %v127_v14, %v126_v7  ;;  %v131_v23 = vor.u32 %v130_v16, %v129_v9  ;;  %v220_v35 = vshll.u32 %v1102_v62, %v217_v0  ;;  %v221_v38 = vshrl.u32 %v1103_v2, %v218_v21 }
  0x9b   :  { %v136_v24 = vsel %vm132_vm2, %v116_v13, %v119_v17  ;;  %v137_v25 = vsel %vm135_vm5, %v125_v20, 2102212464  ;;  %v140_v26 = vsel %vm132_vm2, %v119_v17, %v122_v19  ;;  %v144_v27 = vsel %vm132_vm2, %v122_v19, %v125_v20 }
  0x9c   :  { %v138_v30 = vsel %vm134_vm4, %v122_v19, %v137_v25  ;;  %v141_v31 = vsel %vm135_vm5, %v128_v22, 920167782  ;;  %v145_v33 = vsel %vm135_vm5, %v131_v23, 1326507024  ;;  %v223_v39 = vshll.u32 %v1103_v2, %v217_v0 }
  0x9d   :  { %v142_v36 = vsel %vm134_vm4, %v125_v20, %v141_v31  ;;  %v146_v37 = vsel %vm134_vm4, %v128_v22, %v145_v33  ;;  %v139_v40 = vsel %vm133_vm3, %v136_v24, %v138_v30  ;;  %v224_v44 = vshrl.u32 %v1104_v4, %v218_v21 }
  0x9e   :  { %v143_v41 = vsel %vm133_vm3, %v140_v26, %v142_v36  ;;  %v147_v43 = vsel %vm133_vm3, %v144_v27, %v146_v37  ;;  %v222_v49 = vor.u32 %v221_v38, %v220_v35  ;;  %v226_v51 = vshll.u32 %v1104_v4, %v217_v0 }
  0x9f   :  { %v1219_v45 = vmul.u32.u64.low %v1188_v57, %v147_v43  ;;  %v1220_v46 = vmul.u32.u64.high %v1188_v57, %v147_v43, %v1219_v45  ;;  %v1223_v47 = vmul.u32.u64.low %v1188_v57, %v143_v41  ;;  %v1224_v48 = vmul.u32.u64.high %v1188_v57, %v143_v41, %v1223_v47 }
  0xa0   :  { %v225_v50 = vor.u32 %v224_v44, %v223_v39  ;;  %v227_v52 = vshrl.u32 %v1105_v6, %v218_v21  ;;  %v219_v53 = vshrl.u32 %v1102_v62, %v218_v21  ;;  %v229_v54 = vshll.u32 %v1105_v6, %v217_v0 }
  0xa1   :  { %v230_v55 = vshrl.u32 %v1106_v8, %v218_v21  ;;  %v233_v61 = vshrl.u32 %v1107_v15, %v218_v21  ;;  %v155_v63 = vmul.u32 %v1188_v57, %v139_v40  ;;  %v232_v5 = vshll.u32 %v1106_v8, %v217_v0 }
  0xa2   :  { %v228_v3 = vor.u32 %v227_v52, %v226_v51  ;;  %vm235_vm6 = vcmp.lt.s32.totalorder %v1190_v58, 1  ;;  %vm157_vm7 = vc.u32 %v1220_v46, %v1223_v47  ;;  %v158_v7 = vadd.s32 1, %v1224_v48 }
  0xa3   :  { %v231_v9 = vor.u32 %v230_v55, %v229_v54  ;;  %vm236_vm8 = vcmp.lt.s32.totalorder %v1190_v58, 2  ;;  %v234_v10 = vor.u32 %v233_v61, %v232_v5  ;;  %vm237_vm9 = vcmp.lt.s32.totalorder %v1190_v58, 3 }
  0xa4   :  { %vm238_vm10 = vcmp.lt.s32.totalorder %v1190_v58, 4  ;;  %v243_v11 = vsel %vm235_vm6, %v222_v49, %v225_v50  ;;  %v159_v57 = vsel %vm157_vm7, %v158_v7, %v1224_v48  ;;  %v247_v13 = vsel %vm235_vm6, %v225_v50, %v228_v3 }
  0xa5   :  { %v240_v12 = vsel %vm238_vm10, %v228_v3, 2102212464  ;;  %v244_v0 = vsel %vm238_vm10, %v231_v9, 920167782  ;;  %v160_v14 = vadd.s32 %v159_v57, %v155_v63  ;;  %v239_v16 = vsel %vm235_vm6, %v219_v53, %v222_v49 }
  0xa6   :  { %v245_v17 = vsel %vm237_vm9, %v228_v3, %v244_v0  ;;  %v248_v19 = vsel %vm238_vm10, %v234_v10, 1326507024  ;;  %v241_v20 = vsel %vm237_vm9, %v225_v50, %v240_v12  ;;  %v316_v23 = vadd.s32 1, %v1196_v1 }
  0xa7   :  { %v246_v21 = vsel %vm236_vm8, %v243_v11, %v245_v17  ;;  %v249_v22 = vsel %vm237_vm9, %v231_v9, %v248_v19  ;;  %v161_v24 = vadd.s32 536870912, %v160_v14  ;;  %v242_v35 = vsel %vm236_vm8, %v239_v16, %v241_v20 }
  0xa8   :  { %v250_v25 = vsel %vm236_vm8, %v247_v13, %v249_v22  ;;  %v1249_v26 = vmul.u32.u64.low %v1192_v59, %v246_v21  ;;  %v1250_v27 = vmul.u32.u64.high %v1192_v59, %v246_v21, %v1249_v26  ;;  %vm317_vm11 = vcmp.gt.s32.totalorder %v316_v23, 0 }
  0xa9   :  { %v1253_v30 = vmul.u32.u64.low %v1192_v59, %v250_v25  ;;  %v1254_v31 = vmul.u32.u64.high %v1192_v59, %v250_v25, %v1253_v30  ;;  %v162_v33 = vshrl.u32 %v161_v24, 30  ;;  %v318_v36 = vsel %vm317_vm11, %v316_v23, 0 }
  0xaa   :  { %v261_v1 = vadd.s32 1, %v1250_v27  ;;  %v1261_v38 = vmul.f32 %v1168_v18, %v1186_v56  ;;  %v313_v39 = vand.u32 8388607, %v306_v60  ;;  %v258_v40 = vmul.u32 %v1192_v59, %v242_v35 }
  0xab   :  { %v163_v37 = vshll.u32 %v162_v33, 30  ;;  %vm260_vm12 = vc.u32 %v1254_v31, %v1249_v26  ;;  %v320_v41 = vand.u32 31, %v318_v36  ;;  %v186_v50 = vsub.s32 4, %v162_v33 }
  0xac   :  { %v262_v58 = vsel %vm260_vm12, %v261_v1, %v1250_v27  ;;  %v314_v48 = vor.u32 8388608, %v313_v39  ;;  %v412_v49 = vand.u32 2139095040, %v1261_v38  ;;  %v156_v59 = vadd.s32 %v1223_v47, %v1220_v46 }
  0xad   :  { %v164_v43 = vsub.s32 %v160_v14, %v163_v37  ;;  %v263_v44 = vadd.s32 %v262_v58, %v258_v40  ;;  %v321_v18 = vsub.s32 32, %v320_v41  ;;  %v1280_v55 = vshrl.u32 %v318_v36, 5 }
  0xae   :  { %v1282_v61 = vshll.u32 %v314_v48, 8  ;;  %v413_v63 = vshrl.u32 %v412_v49, 23  ;;  %v187_v3 = vsel %vm102_vm14, %v186_v50, %v162_v33  ;;  %v1287_v32 = vadd.s32 %v1249_v26, %v1254_v31 }
  0xaf   :  { %v166_v45 = vsub.s32 0, %v164_v43  ;;  %v264_v51 = vadd.s32 536870912, %v263_v44  ;;  %v333_v7 = vshrl.u32 %v1106_v8, %v321_v18  ;;  %v323_v46 = vshll.u32 %v1102_v62, %v320_v41 }
  0xb0   :  { %v324_v47 = vshrl.u32 %v1103_v2, %v321_v18  ;;  %v327_v10 = vshrl.u32 %v1104_v4, %v321_v18  ;;  %v326_v57 = vshll.u32 %v1103_v2, %v320_v41  ;;  %v330_v12 = vshrl.u32 %v1105_v6, %v321_v18 }
  0xb1   :  { %v977_v56 = vmin.u32 %v166_v45, %v164_v43  ;;  %v1278_v53 = vshrl.u32 %v264_v51, 30  ;;  %v332_v0 = vshll.u32 %v1105_v6, %v320_v41  ;;  %v1301_v13 = vsel %vm1271_vm13, 0, %v187_v3 }
  0xb2   :  { %v322_v14 = vshrl.u32 %v1102_v62, %v321_v18  ;;  %v329_v16 = vshll.u32 %v1104_v4, %v320_v41  ;;  %v336_v21 = vshrl.u32 %v1107_v15, %v321_v18  ;;  %v325_v24 = vor.u32 %v324_v47, %v323_v46 }
  0xb3   :  { %v168_v54 = vclz %v977_v56  ;;  %v266_v5 = vshll.u32 %v1278_v53, 30  ;;  %v334_v20 = vor.u32 %v333_v7, %v332_v0  ;;  %v328_v25 = vor.u32 %v327_v10, %v326_v57 }
  0xb4   :  { %v605_v27 = vadd.s32 3, %v1301_v13  ;;  %v331_v30 = vor.u32 %v330_v12, %v329_v16  ;;  %v335_v31 = vshll.u32 %v1106_v8, %v320_v41  ;;  %vm341_vm0 = vcmp.lt.s32.totalorder %v1280_v55, 4 }
  0xb5   :  { %v978_v9 = vadd.s32 4294967294, %v168_v54  ;;  %v1294_v11 = vsub.s32 %v263_v44, %v266_v5  ;;  %vm338_vm1 = vcmp.lt.s32.totalorder %v1280_v55, 1  ;;  %v347_v39 = vsel %vm341_vm0, %v334_v20, 920167782 }
  0xb6   :  { %v337_v1 = vor.u32 %v336_v21, %v335_v31  ;;  %vm205_vm2 = vcmp.lt.s32.totalorder %v1173_v29, 0  ;;  %vm340_vm3 = vcmp.lt.s32.totalorder %v1280_v55, 3  ;;  %v346_v41 = vsel %vm338_vm1, %v325_v24, %v328_v25 }
  0xb7   :  { %vm979_vm15 = vcmp.lt.s32.totalorder %v978_v9, 0  ;;  %v269_v19 = vsub.s32 0, %v1294_v11  ;;  %v289_v44 = vsub.s32 4, %v1278_v53  ;;  %vm339_vm4 = vcmp.lt.s32.totalorder %v1280_v55, 2 }
  0xb8   :  { %v171_v17 = vsel %vm979_vm15, 0, %v978_v9  ;;  %v348_v45 = vsel %vm340_vm3, %v331_v30, %v347_v39  ;;  %v342_v50 = vsel %vm338_vm1, %v322_v14, %v325_v24  ;;  %v343_v51 = vsel %vm341_vm0, %v331_v30, 2102212464 }
  0xb9   :  { %v172_v22 = vsub.s32 32, %v171_v17  ;;  %v176_v23 = vsub.s32 4294967266, %v171_v17  ;;  %v981_v26 = vmin.u32 %v269_v19, %v1294_v11  ;;  %v173_v33 = vshll.u32 %v164_v43, %v171_v17 }
  0xba   :  { %v349_v18 = vsel %vm339_vm4, %v346_v41, %v348_v45  ;;  %v350_v56 = vsel %vm338_vm1, %v328_v25, %v331_v30  ;;  %v988_v7 = vadd.s32 4294967169, %v413_v63  ;;  %v344_v47 = vsel %vm340_vm3, %v328_v25, %v343_v51 }
  0xbb   :  { %v174_v35 = vshrl.u32 %v156_v59, %v172_v22  ;;  %v177_v36 = vadd.s32 127, %v176_v23  ;;  %v271_v37 = vclz %v981_v26  ;;  %v351_v59 = vsel %vm341_vm0, %v337_v1, 1326507024 }
  0xbc   :  { %v352_v5 = vsel %vm340_vm3, %v334_v20, %v351_v59  ;;  %v1345_v63 = vmul.u32.u64.low %v1282_v61, %v349_v18  ;;  %v1346_v19 = vmul.u32.u64.high %v1282_v61, %v349_v18, %v1345_v63  ;;  %vm1351_vm6 = vcmp.le.f32.partialorder %v203_v34, 0.7853982 }
  0xbd   :  { %v175_v40 = vor.u32 %v174_v35, %v173_v33  ;;  %v178_v58 = vshll.u32 %v177_v36, 23  ;;  %v982_v43 = vadd.s32 4294967294, %v271_v37  ;;  %v353_v10 = vsel %vm339_vm4, %v350_v56, %v352_v5 }
  0xbe   :  { %v1340_v0 = vmul.u32.u64.low %v1282_v61, %v353_v10  ;;  %v1341_v14 = vmul.u32.u64.high %v1282_v61, %v353_v10, %v1340_v0  ;;  %v419_v22 = vadd.s32 1, %v988_v7  ;;  %v345_v25 = vsel %vm339_vm4, %v342_v50, %v344_v47 }
  0xbf   :  { %v179_v48 = vor.u32 4788187, %v178_v58  ;;  %v182_v49 = vcvt.s32.f32 %v175_v40  ;;  %vm983_vm5 = vcmp.lt.s32.totalorder %v982_v43, 0  ;;  %v1364_v34 = vand.u32 3, %v1301_v13 }
  0xc0   :  { %v274_v3 = vsel %vm983_vm5, 0, %v982_v43  ;;  %vm363_vm7 = vc.u32 %v1341_v14, %v1345_v63  ;;  %vm420_vm8 = vcmp.gt.s32.totalorder %v419_v22, 0  ;;  %v1371_v33 = vand.u32 3, %v605_v27 }
  0xc1   :  { %v180_v54 = vand.u32 2147483647, %v179_v48  ;;  %v275_v9 = vsub.s32 32, %v274_v3  ;;  %v279_v46 = vsub.s32 4294967266, %v274_v3  ;;  %v276_v12 = vshll.u32 %v1294_v11, %v274_v3 }
  0xc2   :  { %v409_v11 = vand.u32 2147483647, %v1261_v38  ;;  %v361_v13 = vmul.u32 %v1282_v61, %v345_v25  ;;  %v421_v35 = vsel %vm420_vm8, %v419_v22, 0  ;;  %vm198_vm9 = vcmp.eq.s32.totalorder %v1364_v34, 2 }
  0xc3   :  { %v183_v57 = vmul.f32 %v182_v49, %v180_v54  ;;  %v277_v16 = vshrl.u32 %v1287_v32, %v275_v9  ;;  %v280_v17 = vadd.s32 127, %v279_v46  ;;  %v290_v32 = vsel %vm205_vm2, %v289_v44, %v1278_v53 }
  0xc4   :  { %v364_v53 = vadd.s32 1, %v1346_v19  ;;  %v292_v55 = vsel %vm1351_vm6, 0, %v290_v32  ;;  %v423_v52 = vand.u32 31, %v421_v35  ;;  %v1382_v41 = vand.u32 8388607, %v409_v11 }
  0xc5   :  { %v184_v20 = vxor.u32 2147483648, %v183_v57  ;;  %v278_v23 = vor.u32 %v277_v16, %v276_v12  ;;  %v281_v24 = vshll.u32 %v280_v17, 23  ;;  %v1378_v58 = vand.u32 3, %v292_v55 }
  0xc6   :  { %v365_v1 = vsel %vm363_vm7, %v364_v53, %v1346_v19  ;;  %v709_v27 = vadd.s32 3, %v292_v55  ;;  %vm611_vm10 = vcmp.eq.s32.totalorder %v1371_v33, 2  ;;  %v1386_v43 = vshrl.u32 %v421_v35, 5 }
  0xc7   :  { %v185_v26 = vsel %vm102_vm14, %v184_v20, %v183_v57  ;;  %v282_v31 = vor.u32 4788187, %v281_v24  ;;  %v285_v37 = vcvt.s32.f32 %v278_v23  ;;  %v366_v39 = vadd.s32 %v365_v1, %v361_v13 }
  0xc8   :  { %v188_v30 = vsel %vm1271_vm13, %v1170_v28, %v185_v26  ;;  %v424_v44 = vsub.s32 32, %v423_v52  ;;  %v426_v45 = vshll.u32 %v1102_v62, %v423_v52  ;;  %vm195_vm11 = vcmp.eq.s32.totalorder %v1364_v34, 0 }
  0xc9   :  { %1037 = vcosq.f32 %v188_v30  ;;  %v283_v36 = vand.u32 2147483647, %v282_v31  ;;  %v367_v61 = vadd.s32 536870912, %v366_v39  ;;  %vm608_vm12 = vcmp.eq.s32.totalorder %v1371_v33, 0 }
  0xca   :  { %1039 = vsinq.f32 %v188_v30  ;;  %v429_v49 = vshll.u32 %v1103_v2, %v423_v52  ;;  %v432_v50 = vshll.u32 %v1104_v4, %v423_v52  ;;  %v435_v51 = vshll.u32 %v1105_v6, %v423_v52 }
  0xcb   :  { %v286_v40 = vmul.f32 %v285_v37, %v283_v36  ;;  %vm194_vm13 = vcmp.lt.s32.totalorder %v1364_v34, 2  ;;  %vm607_vm14 = vcmp.lt.s32.totalorder %v1371_v33, 2  ;;  %v1396_v18 = vshrl.u32 %v367_v61, 30 }
  0xcc   :  { %v427_v56 = vshrl.u32 %v1103_v2, %v424_v44  ;;  %v430_v59 = vshrl.u32 %v1104_v4, %v424_v44  ;;  %v438_v54 = vshll.u32 %v1106_v8, %v423_v52  ;;  %vm192_vm15 = vweird.f32 %v1170_v28 }
  0xcd   :  { %v287_v48 = vxor.u32 2147483648, %v286_v40  ;;  %v433_v5 = vshrl.u32 %v1105_v6, %v424_v44  ;;  %v436_v7 = vshrl.u32 %v1106_v8, %v424_v44  ;;  %v439_v9 = vshrl.u32 %v1107_v15, %v424_v44 }
  0xce   :  { %v369_v2 = vshll.u32 %v1396_v18, 30  ;;  %v425_v4 = vshrl.u32 %v1102_v62, %v424_v44  ;;  %v428_v47 = vor.u32 %v427_v56, %v426_v45  ;;  %v431_v10 = vor.u32 %v430_v59, %v429_v49 }
  0xcf   :  { %v288_v3 = vsel %vm205_vm2, %v287_v48, %v286_v40  ;;  %v434_v57 = vor.u32 %v433_v5, %v432_v50  ;;  %v437_v12 = vor.u32 %v436_v7, %v435_v51  ;;  %v440_v8 = vor.u32 %v439_v9, %v438_v54 }
  0xd0   :  { %v291_v46 = vsel %vm1351_vm6, %v1173_v29, %v288_v3  ;;  %v1412_v6 = vsub.s32 %v366_v39, %v369_v2  ;;  %vm441_vm0 = vcmp.lt.s32.totalorder %v1386_v43, 1  ;;  %v1415_v17 = vand.u32 3, %v709_v27 }
  0xd1   :  { %1041 = vcosq.f32 %v291_v46  ;;  %vm444_vm1 = vcmp.lt.s32.totalorder %v1386_v43, 4  ;;  %v445_v62 = vsel %vm441_vm0, %v425_v4, %v428_v47  ;;  %vm443_vm2 = vcmp.lt.s32.totalorder %v1386_v43, 3 }
  0xd2   :  { %1043 = vsinq.f32 %v291_v46  ;;  %v372_v20 = vsub.s32 0, %v1412_v6  ;;  %v446_v21 = vsel %vm444_vm1, %v434_v57, 2102212464  ;;  %v449_v32 = vsel %vm441_vm0, %v428_v47, %v431_v10 }
  0xd3   :  { %v1038_v0 = vpop.eup %1037  ;;  %v447_v24 = vsel %vm443_vm2, %v431_v10, %v446_v21  ;;  %vm298_vm3 = vcmp.eq.s32.totalorder %v1378_v58, 0  ;;  %v417_v31 = vor.u32 8388608, %v1382_v41  ;;  %vm297_vm4 = vcmp.lt.s32.totalorder %v1378_v58, 2 }
  0xd4   :  { %v1040_v15 = vpop.eup %1039  ;;  %v199_v16 = vxor.u32 2147483648, %v1038_v0  ;;  %v985_v30 = vmin.u32 %v372_v20, %v1412_v6  ;;  %vm301_vm5 = vcmp.eq.s32.totalorder %v1378_v58, 2  ;;  %vm442_vm6 = vcmp.lt.s32.totalorder %v1386_v43, 2 }
  0xd5   :  { %v196_v19 = vxor.u32 2147483648, %v1040_v15  ;;  %vm295_vm7 = vweird.f32 %v1173_v29  ;;  %v448_v34 = vsel %vm442_vm6, %v445_v62, %v447_v24  ;;  %vm711_vm8 = vcmp.lt.s32.totalorder %v1415_v17, 2 }
  0xd6   :  { %v200_v22 = vsel %vm198_vm9, %v199_v16, %v1040_v15  ;;  %v613_v23 = vsel %vm611_vm10, %v199_v16, %v1040_v15  ;;  %v374_v36 = vclz %v985_v30  ;;  %v450_v33 = vsel %vm444_vm1, %v437_v12, 920167782 }
  0xd7   :  { %v197_v25 = vsel %vm195_vm11, %v1038_v0, %v196_v19  ;;  %v610_v26 = vsel %vm608_vm12, %v1038_v0, %v196_v19  ;;  %v453_v37 = vsel %vm441_vm0, %v431_v10, %v434_v57  ;;  %v454_v28 = vsel %vm444_vm1, %v440_v8, 1326507024 }
  0xd8   :  { %v201_v53 = vsel %vm194_vm13, %v197_v25, %v200_v22  ;;  %v614_v55 = vsel %vm607_vm14, %v610_v26, %v613_v23  ;;  %v986_v1 = vadd.s32 4294967294, %v374_v36  ;;  %v451_v39 = vsel %vm443_vm2, %v434_v57, %v450_v33 }
  0xd9   :  { %v202_v13 = vsel %vm192_vm15, nan, %v201_v53  ;;  %v615_v35 = vsel %vm192_vm15, nan, %v614_v55  ;;  %v455_v52 = vsel %vm443_vm2, %v437_v12, %v454_v28  ;;  %v457_v40 = vshll.u32 %v417_v31, 8 }
  0xda   :  { %928 = vst [vmem:[#allocation2] sm:$0xff] %v202_v13  ;;  %932 = vst [vmem:[#allocation2 + $0x10] sm:$0xff] %v202_v13  ;;  %vm712_vm9 = vcmp.eq.s32.totalorder %v1415_v17, 0  ;;  %vm715_vm10 = vcmp.eq.s32.totalorder %v1415_v17, 2  ;;  %v452_v41 = vsel %vm442_vm6, %v449_v32, %v451_v39  ;;  %v456_v61 = vsel %vm442_vm6, %v453_v37, %v455_v52 }
  0xdb   :  { %936 = vst [vmem:[#allocation4] sm:$0xff] %v615_v35  ;;  %940 = vst [vmem:[#allocation4 + $0x10] sm:$0xff] %v615_v35  ;;  %v1042_v27 = vpop.eup %1041  ;;  %vm987_vm11 = vcmp.lt.s32.totalorder %v986_v1, 0  ;;  %v1470_v48 = vmul.u32.u64.low %v457_v40, %v456_v61  ;;  %v1471_v49 = vmul.u32.u64.high %v457_v40, %v456_v61, %v1470_v48  ;;  %v362_v5 = vadd.s32 %v1345_v63, %v1341_v14 }
  0xdc   :  { %v1044_v44 = vpop.eup %1043  ;;  %v302_v45 = vxor.u32 2147483648, %v1042_v27  ;;  %v377_v51 = vsel %vm987_vm11, 0, %v986_v1  ;;  %v1473_v56 = vmul.u32.u64.low %v457_v40, %v452_v41  ;;  %v1474_v59 = vmul.u32.u64.high %v457_v40, %v452_v41, %v1473_v56 }
  0xdd   :  { %v299_v50 = vxor.u32 2147483648, %v1044_v44  ;;  %v378_v43 = vsub.s32 32, %v377_v51  ;;  %v379_v46 = vshll.u32 %v1412_v6, %v377_v51  ;;  %v382_v2 = vsub.s32 4294967266, %v377_v51 }
  0xde   :  { %v303_v54 = vsel %vm301_vm5, %v302_v45, %v1044_v44  ;;  %v717_v3 = vsel %vm715_vm10, %v302_v45, %v1044_v44  ;;  %v465_v57 = vadd.s32 %v1473_v56, %v1471_v49  ;;  %vm466_vm12 = vc.u32 %v1471_v49, %v1473_v56 }
  0xdf   :  { %v300_v7 = vsel %vm298_vm3, %v1042_v27, %v299_v50  ;;  %v714_v9 = vsel %vm712_vm9, %v1042_v27, %v299_v50  ;;  %v380_v10 = vshrl.u32 %v362_v5, %v378_v43  ;;  %v383_v12 = vadd.s32 127, %v382_v2 }
  0xe0   :  { %v304_v4 = vsel %vm297_vm4, %v300_v7, %v303_v54  ;;  %v718_v47 = vsel %vm711_vm8, %v714_v9, %v717_v3  ;;  %v467_v58 = vadd.s32 1, %v1474_v59  ;;  %v464_v8 = vmul.u32 %v457_v40, %v448_v34 }
  0xe1   :  { %v305_v14 = vsel %vm295_vm7, nan, %v304_v4  ;;  %v719_v63 = vsel %vm295_vm7, nan, %v718_v47  ;;  %v381_v0 = vor.u32 %v380_v10, %v379_v46  ;;  %v384_v6 = vshll.u32 %v383_v12, 23 }
  0xe2   :  { %929 = vst [vmem:[#allocation2 + $0x8] sm:$0xff] %v305_v14  ;;  %933 = vst [vmem:[#allocation2 + $0x18] sm:$0xff] %v305_v14  ;;  %v468_v15 = vsel %vm466_vm12, %v467_v58, %v1474_v59  ;;  %v392_v20 = vsub.s32 4, %v1396_v18  ;;  %vm308_vm13 = vcmp.lt.s32.totalorder %v1183_v42, 0  ;;  %vm307_vm14 = vcmp.le.f32.partialorder %v306_v60, 0.7853982 }
  0xe3   :  { %937 = vst [vmem:[#allocation4 + $0x8] sm:$0xff] %v719_v63  ;;  %941 = vst [vmem:[#allocation4 + $0x18] sm:$0xff] %v719_v63  ;;  %v385_v16 = vor.u32 4788187, %v384_v6  ;;  %v469_v17 = vadd.s32 %v468_v15, %v464_v8  ;;  %v388_v19 = vcvt.s32.f32 %v381_v0  ;;  %vm398_vm6 = vweird.f32 %v1183_v42 }
  0xe4   :  { %v393_v32 = vsel %vm308_vm13, %v392_v20, %v1396_v18  ;;  %vm411_vm7 = vcmp.lt.s32.totalorder %v1261_v38, 0  ;;  %vm410_vm8 = vcmp.le.f32.partialorder %v409_v11, 0.7853982 }
  0xe5   :  { %v386_v62 = vand.u32 2147483647, %v385_v16  ;;  %v470_v29 = vadd.s32 536870912, %v469_v17  ;;  %v395_v31 = vsel %vm307_vm14, 0, %v393_v32 }
  0xe6   :  { %v813_v13 = vadd.s32 3, %v395_v31  ;;  %v399_v36 = vand.u32 3, %v395_v31 }
  0xe7   :  { %v389_v21 = vmul.f32 %v388_v19, %v386_v62  ;;  %v471_v22 = vshrl.u32 %v470_v29, 30 }
  0xe8   :  { %v814_v33 = vand.u32 3, %v813_v13  ;;  %vm400_vm0 = vcmp.lt.s32.totalorder %v399_v36, 2  ;;  %vm401_vm1 = vcmp.eq.s32.totalorder %v399_v36, 0  ;;  %vm404_vm2 = vcmp.eq.s32.totalorder %v399_v36, 2 }
  0xe9   :  { %v390_v23 = vxor.u32 2147483648, %v389_v21  ;;  %v472_v24 = vshll.u32 %v471_v22, 30  ;;  %v495_v9 = vsub.s32 4, %v471_v22 }
  0xea   :  { %vm819_vm3 = vcmp.eq.s32.totalorder %v814_v33, 2  ;;  %vm815_vm4 = vcmp.lt.s32.totalorder %v814_v33, 2  ;;  %vm816_vm5 = vcmp.eq.s32.totalorder %v814_v33, 0 }
  0xeb   :  { %v391_v25 = vsel %vm308_vm13, %v390_v23, %v389_v21  ;;  %v473_v26 = vsub.s32 %v469_v17, %v472_v24  ;;  %v496_v2 = vsel %vm411_vm7, %v495_v9, %v471_v22 }
  0xec   :  { %v394_v30 = vsel %vm307_vm14, %v1183_v42, %v391_v25  ;;  %v498_v47 = vsel %vm410_vm8, 0, %v496_v2 }
  0xed   :  { %1045 = vcosq.f32 %v394_v30  ;;  %v475_v53 = vsub.s32 0, %v473_v26  ;;  %v917_v10 = vadd.s32 3, %v498_v47 }
  0xee   :  { %1047 = vsinq.f32 %v394_v30 }
  0xef   :  { %v989_v55 = vmin.u32 %v475_v53, %v473_v26  ;;  %v918_v14 = vand.u32 3, %v917_v10 }
  0xf1   :  { %v477_v35 = vclz %v989_v55  ;;  %vm923_vm10 = vcmp.eq.s32.totalorder %v918_v14, 2  ;;  %vm920_vm12 = vcmp.eq.s32.totalorder %v918_v14, 0  ;;  %vm919_vm14 = vcmp.lt.s32.totalorder %v918_v14, 2 }
  0xf3   :  { %v990_v34 = vadd.s32 4294967294, %v477_v35 }
  0xf5   :  { %vm991_vm15 = vcmp.lt.s32.totalorder %v990_v34, 0 }
  0xf6   :  { %v480_v37 = vsel %vm991_vm15, 0, %v990_v34  ;;  %vm501_vm15 = vweird.f32 %v1261_v38 }
  0xf7   :  { %v1046_v18 = vpop.eup %1045  ;;  %v481_v28 = vsub.s32 32, %v480_v37  ;;  %v485_v60 = vsub.s32 4294967266, %v480_v37  ;;  %v482_v40 = vshll.u32 %v473_v26, %v480_v37 }
  0xf8   :  { %v1048_v1 = vpop.eup %1047  ;;  %v405_v39 = vxor.u32 2147483648, %v1046_v18 }
  0xf9   :  { %v402_v52 = vxor.u32 2147483648, %v1048_v1  ;;  %v483_v27 = vshrl.u32 %v465_v57, %v481_v28  ;;  %v486_v41 = vadd.s32 127, %v485_v60  ;;  %v502_v57 = vand.u32 3, %v498_v47 }
  0xfa   :  { %v406_v61 = vsel %vm404_vm2, %v405_v39, %v1048_v1  ;;  %v821_v44 = vsel %vm819_vm3, %v405_v39, %v1048_v1 }
  0xfb   :  { %v403_v45 = vsel %vm401_vm1, %v1046_v18, %v402_v52  ;;  %v484_v48 = vor.u32 %v483_v27, %v482_v40  ;;  %v487_v49 = vshll.u32 %v486_v41, 23  ;;  %v818_v50 = vsel %vm816_vm5, %v1046_v18, %v402_v52 }
  0xfc   :  { %v407_v51 = vsel %vm400_vm0, %v403_v45, %v406_v61  ;;  %v822_v56 = vsel %vm815_vm4, %v818_v50, %v821_v44  ;;  %vm507_vm9 = vcmp.eq.s32.totalorder %v502_v57, 2  ;;  %vm504_vm11 = vcmp.eq.s32.totalorder %v502_v57, 0 }
  0xfd   :  { %v408_v59 = vsel %vm398_vm6, nan, %v407_v51  ;;  %v488_v54 = vor.u32 4788187, %v487_v49  ;;  %v823_v3 = vsel %vm398_vm6, nan, %v822_v56  ;;  %v491_v43 = vcvt.s32.f32 %v484_v48 }
  0xfe   :  { %930 = vst [vmem:[#allocation2 + $0x20] sm:$0xff] %v408_v59  ;;  %934 = vst [vmem:[#allocation2 + $0x30] sm:$0xff] %v408_v59  ;;  %vm503_vm13 = vcmp.lt.s32.totalorder %v502_v57, 2 }
  0xff   :  { %938 = vst [vmem:[#allocation4 + $0x20] sm:$0xff] %v823_v3  ;;  %942 = vst [vmem:[#allocation4 + $0x30] sm:$0xff] %v823_v3  ;;  %v489_v5 = vand.u32 2147483647, %v488_v54 }
 0x101   :  { %v492_v7 = vmul.f32 %v491_v43, %v489_v5 }
 0x103   :  { %v493_v46 = vxor.u32 2147483648, %v492_v7 }
 0x105   :  { %v494_v42 = vsel %vm411_vm7, %v493_v46, %v492_v7 }
 0x106   :  { %v497_v4 = vsel %vm410_vm8, %v1261_v38, %v494_v42 }
 0x107   :  { %1049 = vcosq.f32 %v497_v4 }
 0x108   :  { %1051 = vsinq.f32 %v497_v4 }
 0x111   :  { %v1050_v63 = vpop.eup %1049 }
 0x112   :  { %v1052_v12 = vpop.eup %1051  ;;  %v508_v58 = vxor.u32 2147483648, %v1050_v63 }
 0x113   :  { %v505_v0 = vxor.u32 2147483648, %v1052_v12 }
 0x114   :  { %v509_v11 = vsel %vm507_vm9, %v508_v58, %v1052_v12  ;;  %v925_v6 = vsel %vm923_vm10, %v508_v58, %v1052_v12 }
 0x115   :  { %v506_v8 = vsel %vm504_vm11, %v1050_v63, %v505_v0  ;;  %v922_v15 = vsel %vm920_vm12, %v1050_v63, %v505_v0 }
 0x116   :  { %v510_v16 = vsel %vm503_vm13, %v506_v8, %v509_v11  ;;  %v926_v17 = vsel %vm919_vm14, %v922_v15, %v925_v6 }
 0x117   :  { %v511_v62 = vsel %vm501_vm15, nan, %v510_v16  ;;  %v927_v19 = vsel %vm501_vm15, nan, %v926_v17 }
 0x118   :  { %931 = vst [vmem:[#allocation2 + $0x28] sm:$0xff] %v511_v62  ;;  %935 = vst [vmem:[#allocation2 + $0x38] sm:$0xff] %v511_v62 }
 0x119   :  { %939 = vst [vmem:[#allocation4 + $0x28] sm:$0xff] %v927_v19  ;;  %943 = vst [vmem:[#allocation4 + $0x38] sm:$0xff] %v927_v19 }
 0x11a   :  { %1064 = shalt.err (!%p1061_p4)
}
 0x11b   :  { %s1065_s13 = scalar_lea.hbm %s1546_s5, 1024 }
 0x11c   :  { %p1066_p5 = scmp.ne.s32.totalorder %s1546_s5, %s1065_s13  ;;  %p1069_p6 = scmp.lt.u32.totalorder %s1065_s13, %s1546_s5 }
 0x11e   :  { %p1071_p7 = pnand %p1069_p6, %p1066_p5 }
 0x120   :  { %1074 = shalt.err (!%p1071_p7)
}
 0x121   :  { %s1110_s18 = smov 512   ;;  %s1111_s19 = smov 32  }
 0x122   :  { %955 = dma.vmem_to_hbm [thread:$0]  %s950_s3, 1024, %s1546_s5, [#allocation3], %s1110_s18, %s1110_s18, %s1111_s19  }
 0x123   :  { %s1075_s22 = scalar_lea.vmem %s1510_s9, 1024  ;;  %p1080_p9 = scmp.lt.s32.totalorder %s1510_s9, %s1510_s9 }
 0x124   :  { %p1076_p8 = scmp.ne.s32.totalorder %s1510_s9, %s1075_s22  ;;  %p1081_p10 = scmp.lt.s32.totalorder %s1075_s22, %s1075_s22 }
 0x126   :  { %p1082_p11 = por %p1081_p10, %p1080_p9 }
 0x128   :  { %p1083_p12 = pnand %p1082_p11, %p1076_p8 }
 0x12a   :  { %1086 = shalt.err (!%p1083_p12)
}
 0x12b   :  { %s1087_s25 = scalar_lea.hbm %s1547_s6, 1024 }
 0x12c   :  { %p1088_p13 = scmp.ne.s32.totalorder %s1547_s6, %s1087_s25  ;;  %p1091_p0 = scmp.lt.u32.totalorder %s1087_s25, %s1547_s6 }
 0x12e   :  { %p1093_p1 = pnand %p1091_p0, %p1088_p13 }
 0x130   :  { %1096 = shalt.err (!%p1093_p1)
}
 0x131   :  { %967 = dma.vmem_to_hbm [thread:$0]  %s1510_s9, 1024, %s1547_s6, [#allocation5], %s1110_s18, %s1110_s18, %s1111_s19  }
 0x132   :  { %1097 = dma.done.wait [#allocation3], 1024  }
 0x133   :  { %1098 = vsyncadd [#allocation3], 4294966272 }
 0x134   :  { %1099 = dma.done.wait [#allocation5], 1024  }
 0x135   :  { %1100 = vsyncadd [#allocation5], 4294966272 }
 0x136   :  { %974 = vsyncpa [#allocation3], 1 }
 0x137   :  { %975 = vsyncpa [#allocation5], 1 }

</bundles_post_ra>
